<compile_context>
chip_gen: v7x
topology: tpu7x:2x2x1
jax: 0.10.0
libtpu: 0.0.40
codegen_flags: <defaults>
</compile_context>

<pallas_src>
import jax
import jax.numpy as jnp
from jax import lax
from jax.experimental import pallas as pl
from jax.experimental.pallas import tpu as pltpu


def _vmem_capacity_bytes():
    """Per-TensorCore VMEM capacity; conservative fallback if query fails."""
    try:
        info = pltpu.get_tpu_info()
        cap = getattr(info, "vmem_capacity_bytes", None)
        if cap:
            return int(cap)
    except Exception:
        pass
    return 64 << 20  # v7x per-TC VMEM (smallest of the three generations)


def _pick_tiles(nc, hw, itemsize, vmem_cap):
    """Pick (row-tile tnc, inner strip) sizes.

    strip: inner sublane strip so each live f32 temp stays ~<=0.5 MiB.
    tnc:   pipelined input block; targets ~1-8 MiB per block and >= ~8 grid
           blocks when the array is large enough, capped by a VMEM budget
           derived from the detected chip's VMEM capacity.
    """
    strip = (65536 // max(hw, 1)) // 8 * 8
    strip = max(8, min(strip, 512))
    nc_pad = -(-nc // 8) * 8
    strip = min(strip, nc_pad)

    row_bytes = hw * itemsize
    # Double-buffered input blocks must leave room for strip temps & scratch.
    max_block_bytes = min(8 << 20, max(1 << 20, int(0.35 * vmem_cap) // 2))
    tnc_bytes = max(1, max_block_bytes // max(row_bytes, 1))
    tnc_split = -(-nc // 8)                      # >= ~8 blocks when nc is big
    min_block_rows = max(1, (1 << 20) // max(row_bytes, 1))  # >= ~1 MiB blocks
    tnc = min(tnc_bytes, max(tnc_split, min_block_rows))
    tnc = max(strip, (tnc // strip) * strip)     # multiple of strip
    tnc = min(tnc, -(-nc // strip) * strip)      # don't exceed (rounded) nc
    return int(tnc), int(strip)


def _make_kernel(w, tnc, strip, nc, inv_denom_h, inv_denom_w,
                 math_dtype, needs_row_mask):
    n_strips = tnc // strip

    def kernel(wh_ref, ww_ref, x_ref, o_ref):
        # {0,1} boundary masks, (1, hw), resident; loaded once per grid step.
        wh = wh_ref[...]
        ww = ww_ref[...]

        def strip_body(s, carry):
            acc_h, acc_w = carry
            start = pl.multiple_of(s * strip, 8)
            xs = x_ref[pl.ds(start, strip), :].astype(math_dtype)  # (strip,hw)
            x_up = pltpu.roll(xs, w, axis=1)     # neighbour at flat index i-W
            x_left = pltpu.roll(xs, 1, axis=1)   # neighbour at flat index i-1
            dh = jnp.abs(xs - x_up) * wh         # {0,1} mask: exact, any dtype
            dw = jnp.abs(xs - x_left) * ww
            # Per-row partial sums, accumulated in f32: (strip, 1).
            rh = jnp.sum(dh.astype(jnp.float32), axis=1, keepdims=True)
            rw = jnp.sum(dw.astype(jnp.float32), axis=1, keepdims=True)
            if needs_row_mask:
                # Tail padding rows may hold garbage (NaN/Inf) -> SELECT them
                # away at (strip, 1) row granularity (cost ~1/hw of the old
                # full-block mask; never a multiply, which would keep NaN).
                row = lax.broadcasted_iota(jnp.int32, (strip, 1), 0)
                gidx = pl.program_id(0) * tnc + s * strip + row
                valid = gidx < nc
                rh = jnp.where(valid, rh, 0.0)
                rw = jnp.where(valid, rw, 0.0)
            return acc_h + rh, acc_w + rw

        init = (jnp.zeros((strip, 1), jnp.float32),
                jnp.zeros((strip, 1), jnp.float32))
        acc_h, acc_w = lax.fori_loop(0, n_strips, strip_body, init)
        p = (jnp.sum(acc_h) * inv_denom_h + jnp.sum(acc_w) * inv_denom_w)
        o_ref[...] = jnp.broadcast_to(p, o_ref.shape).astype(jnp.float32)

    return kernel


@jax.jit
def tv_loss(x):
    """x: (N, C, H, W). Returns scalar float32 TV loss (matches TVLoss.forward)."""
    n, c, h, w = x.shape
    nc, hw = n * c, h * w
    x_flat = x.reshape(nc, hw)                    # zero-copy collapse

    itemsize = jnp.dtype(x.dtype).itemsize
    vmem_cap = _vmem_capacity_bytes()
    tnc, strip = _pick_tiles(nc, hw, itemsize, vmem_cap)
    num_blocks = pl.cdiv(nc, tnc)
    needs_row_mask = (nc % tnc) != 0

    denom_h = n * c * (h - 1) * w
    denom_w = n * c * h * (w - 1)
    # NOTE: the torch reference divides by zero (-> NaN) when H==1 or W==1;
    # here the degenerate term contributes 0 instead.
    inv_denom_h = 0.0 if denom_h == 0 else 1.0 / float(denom_h)
    inv_denom_w = 0.0 if denom_w == 0 else 1.0 / float(denom_w)

    # bf16 elementwise math for bf16 inputs (bf16 VPU on v6e/v7x); f32 accum.
    math_dtype = jnp.bfloat16 if x.dtype == jnp.bfloat16 else jnp.float32

    # {0,1} boundary masks per flattened lane: valid H-neighbour iff lane >= W,
    # valid W-neighbour iff lane is not at a row start.
    lane = jnp.arange(hw, dtype=jnp.int32)
    wh = (lane >= w).astype(math_dtype).reshape(1, hw)
    ww = ((lane % w) != 0).astype(math_dtype).reshape(1, hw)

    block_bytes = tnc * hw * itemsize
    strip_bytes = strip * hw * 4
    vmem_limit = 2 * block_bytes + 10 * strip_bytes + (2 << 20)
    vmem_limit = int(max(8 << 20, min(vmem_limit, int(0.7 * vmem_cap))))

    kernel = _make_kernel(w, tnc, strip, nc, inv_denom_h, inv_denom_w,
                          math_dtype, needs_row_mask)
    partials = pl.pallas_call(
        kernel,
        out_shape=jax.ShapeDtypeStruct((num_blocks, 1, 128), jnp.float32),
        grid=(num_blocks,),
        in_specs=[
            pl.BlockSpec((1, hw), lambda i: (0, 0)),    # wh (resident)
            pl.BlockSpec((1, hw), lambda i: (0, 0)),    # ww (resident)
            pl.BlockSpec((tnc, hw), lambda i: (i, 0)),  # x row-tile (pipelined)
        ],
        out_specs=pl.BlockSpec((1, 1, 128), lambda i: (i, 0, 0)),
        compiler_params=pltpu.CompilerParams(
            dimension_semantics=("parallel",),
            vmem_limit_bytes=vmem_limit,
        ),
    )(wh, ww, x_flat)

    # Tiny cross-block reduction of per-tile partials (also sums per-core
    # partials when the "parallel" grid is split across v7x TensorCores).
    return jnp.sum(partials[:, 0, 0])


def _tv_loss_ref(x):
    x = x.astype(jnp.float32)
    n, c, h, w = x.shape
    tv_h = jnp.sum(jnp.abs(x[:, :, 1:, :] - x[:, :, :-1, :])) / (n * c * (h - 1) * w)
    tv_w = jnp.sum(jnp.abs(x[:, :, :, 1:] - x[:, :, :, :-1])) / (n * c * h * (w - 1))
    return tv_w + tv_h


if __name__ == "__main__":
    key = jax.random.PRNGKey(0)
    x = jax.random.normal(key, (2, 4, 16, 16), dtype=jnp.float32)

    out = tv_loss(x)
    out = jax.block_until_ready(out)

    ref = _tv_loss_ref(x)
    assert jnp.allclose(out, ref, rtol=1e-5, atol=1e-5), (out, ref)

    print("KERNEL_OK")
</pallas_src>

<mosaic_0001>
module attributes {stable_mosaic.version = 11 : i64} {
  func.func @kernel(%arg0: i32, %arg1: memref<1x256xf32, #tpu.memory_space<vmem>>, %arg2: memref<1x256xf32, #tpu.memory_space<vmem>>, %arg3: memref<8x256xf32, #tpu.memory_space<vmem>>, %arg4: memref<1x1x128xf32, #tpu.memory_space<vmem>>) attributes {dimension_semantics = [#tpu.dimension_semantics<parallel>], iteration_bounds = array<i64: 1>, scalar_prefetch = 0 : i64, scratch_operands = 0 : i64, tpu.core_type = #tpu.core_type<tc>, window_params = [{pipeline_mode = #tpu.pipeline_mode<synchronous>, transform_indices = @transform_0, window_bounds = array<i64: 1, 256>}, {pipeline_mode = #tpu.pipeline_mode<synchronous>, transform_indices = @transform_1, window_bounds = array<i64: 1, 256>}, {transform_indices = @transform_2, window_bounds = array<i64: 8, 256>}, {transform_indices = @transform_3, window_bounds = array<i64: 1, 1, 128>}]} {
    %c0 = arith.constant 0 : index
    %c0_0 = arith.constant 0 : index
    %0 = vector.load %arg1[%c0, %c0_0] : memref<1x256xf32, #tpu.memory_space<vmem>>, vector<1x256xf32>
    %c0_1 = arith.constant 0 : index
    %c0_2 = arith.constant 0 : index
    %1 = vector.load %arg2[%c0_1, %c0_2] : memref<1x256xf32, #tpu.memory_space<vmem>>, vector<1x256xf32>
    %cst = arith.constant 0.000000e+00 : f32
    %2 = vector.broadcast %cst : f32 to vector<8x1xf32>
    %cst_3 = arith.constant 0.000000e+00 : f32
    %3 = vector.broadcast %cst_3 : f32 to vector<8x1xf32>
    %c0_i32 = arith.constant 0 : i32
    %c8_i32 = arith.constant 8 : i32
    %4 = arith.muli %c0_i32, %c8_i32 : i32
    %5 = tpu.assume_multiple %4, 8 : i32
    %6 = arith.index_cast %5 : i32 to index
    %c0_4 = arith.constant 0 : index
    %7 = vector.load %arg3[%6, %c0_4] : memref<8x256xf32, #tpu.memory_space<vmem>>, vector<8x256xf32>
    %c16_i32 = arith.constant 16 : i32
    %8 = tpu.dynamic_rotate %7 by %c16_i32 dim 1 : vector<8x256xf32>, i32 -> vector<8x256xf32>
    %c1_i32 = arith.constant 1 : i32
    %9 = tpu.dynamic_rotate %7 by %c1_i32 dim 1 : vector<8x256xf32>, i32 -> vector<8x256xf32>
    %10 = arith.subf %7, %8 : vector<8x256xf32>
    %11 = math.absf %10 : vector<8x256xf32>
    %12 = vector.broadcast %0 : vector<1x256xf32> to vector<8x256xf32>
    %13 = arith.mulf %11, %12 : vector<8x256xf32>
    %14 = arith.subf %7, %9 : vector<8x256xf32>
    %15 = math.absf %14 : vector<8x256xf32>
    %16 = vector.broadcast %1 : vector<1x256xf32> to vector<8x256xf32>
    %17 = arith.mulf %15, %16 : vector<8x256xf32>
    %cst_5 = arith.constant dense<0.000000e+00> : vector<8xf32>
    %18 = vector.multi_reduction <add>, %13, %cst_5 [1] : vector<8x256xf32> to vector<8xf32>
    %19 = vector.shape_cast %18 : vector<8xf32> to vector<8x1xf32>
    %cst_6 = arith.constant dense<0.000000e+00> : vector<8xf32>
    %20 = vector.multi_reduction <add>, %17, %cst_6 [1] : vector<8x256xf32> to vector<8xf32>
    %21 = vector.shape_cast %20 : vector<8xf32> to vector<8x1xf32>
    %22 = arith.addf %2, %19 : vector<8x1xf32>
    %23 = arith.addf %3, %21 : vector<8x1xf32>
    %c1_i32_7 = arith.constant 1 : i32
    %24 = vector.shape_cast %22 : vector<8x1xf32> to vector<1x8x1xf32>
    %cst_8 = arith.constant dense<0.000000e+00> : vector<1xf32>
    %25 = vector.multi_reduction <add>, %24, %cst_8 [1, 2] : vector<1x8x1xf32> to vector<1xf32>
    %26 = vector.shape_cast %25 : vector<1xf32> to vector<1x1x1xf32>
    %27 = vector.extract %26[0, 0, 0] : f32 from vector<1x1x1xf32>
    %cst_9 = arith.constant 5.2083336E-4 : f32
    %28 = arith.mulf %27, %cst_9 : f32
    %29 = vector.shape_cast %23 : vector<8x1xf32> to vector<1x8x1xf32>
    %cst_10 = arith.constant dense<0.000000e+00> : vector<1xf32>
    %30 = vector.multi_reduction <add>, %29, %cst_10 [1, 2] : vector<1x8x1xf32> to vector<1xf32>
    %31 = vector.shape_cast %30 : vector<1xf32> to vector<1x1x1xf32>
    %32 = vector.extract %31[0, 0, 0] : f32 from vector<1x1x1xf32>
    %cst_11 = arith.constant 5.2083336E-4 : f32
    %33 = arith.mulf %32, %cst_11 : f32
    %34 = arith.addf %28, %33 : f32
    %35 = vector.broadcast %34 : f32 to vector<1x1x128xf32>
    %c0_12 = arith.constant 0 : index
    %c0_13 = arith.constant 0 : index
    %c0_14 = arith.constant 0 : index
    %36 = vector.load %arg4[%c0_12, %c0_13, %c0_14] : memref<1x1x128xf32, #tpu.memory_space<vmem>>, vector<1x1x128xf32>
    tpu.vector_store %arg4[%c0_12, %c0_13, %c0_14], %35 {strides = array<i32>} : memref<1x1x128xf32, #tpu.memory_space<vmem>>, vector<1x1x128xf32>,
    return
  }
  func.func @transform_0(%arg0: i32) -> (i32, i32) {
    %c0_i32 = arith.constant 0 : i32
    %c0_i32_0 = arith.constant 0 : i32
    %c0_i32_1 = arith.constant 0 : i32
    return %c0_i32, %c0_i32_0 : i32, i32
  }
  func.func @transform_1(%arg0: i32) -> (i32, i32) {
    %c0_i32 = arith.constant 0 : i32
    %c0_i32_0 = arith.constant 0 : i32
    %c0_i32_1 = arith.constant 0 : i32
    return %c0_i32, %c0_i32_0 : i32, i32
  }
  func.func @transform_2(%arg0: i32) -> (i32, i32) {
    %c0_i32 = arith.constant 0 : i32
    %c0_i32_0 = arith.constant 0 : i32
    return %arg0, %c0_i32 : i32, i32
  }
  func.func @transform_3(%arg0: i32) -> (i32, i32, i32) {
    %c0_i32 = arith.constant 0 : i32
    %c0_i32_0 = arith.constant 0 : i32
    %c0_i32_1 = arith.constant 0 : i32
    return %arg0, %c0_i32, %c0_i32_0 : i32, i32, i32
  }
}

</mosaic_0001>

<bundles_post_ra>
// kernel: tv_loss.1
= control target key start
LH: loop header
LB: loop body
LE: loop exit
PB: predicated region body
PF: predicated region fallthrough
CT: control target
= control target key end

     0   :  { %s151_s14 = smov 1   ;;  %s152_s15 = smov 16   ;;  %s198_s0 = inlined_call_operand.vmem [shape: f32[1,256], index: 0, kind: input, shape index: {}]   ;;  %s199_s1 = inlined_call_operand.vmem [shape: f32[1,256], index: 1, kind: input, shape index: {}]   ;;  %s200_s2 = inlined_call_operand.vmem [shape: f32[8,256], index: 2, kind: input, shape index: {}]   ;;  %s201_s3 = inlined_call_operand.hbm [shape: f32[1,1,128], index: 3, kind: output, shape index: {}]  }
   0x1   :  { %v20_v0 = vld [vmem:[%s200_s2] sm:$0xff] }
   0x2   :  { %31 = vrot.lane.b32.xlu1 %v20_v0, %s151_s14  ;;  %22 = vrot.lane.b32.xlu0 %v20_v0, %s152_s15 }
   0x3   :  { %8 = vsyncpa [#allocation3], 0  ;;  %v21_v1 = vld [vmem:[%s200_s2 + $0x8] sm:$0xff]  ;;  %v26_v2 = vlaneseq  ;;  %v16_v9 = vld [vmem:[%s199_s1] sm:$0x3]  ;;  %vm80_vm2 = vcmask 7168  }
   0x4   :  { %v15_v10 = vld [vmem:[%s198_s0] sm:$0x3]  ;;  %s153_s23 = smov [#allocation2]  }
   0x5   :  { %v44_v3 = vshrl.u32 %v26_v2, 7  ;;  %v27_v4 = vand.u32 127, %v26_v2  ;;  %s112_s24 = sshll.u32 %s153_s23, 4  ;;  %s113_s24 = int_to_ptr.vmem [resolvable:$true] %s112_s24 }
   0x6   :  { %33 = vrot.lane.b32.xlu1 %v21_v1, %s151_s14  ;;  %24 = vrot.lane.b32.xlu0 %v21_v1, %s152_s15  ;;  %s127_s26 = scalar_lea.vmem %s113_s24, 16  ;;  %s131_s27 = scalar_lea.vmem %s113_s24, 32 }
   0x7   :  { %v45_v7 = vsub.s32 0, %v44_v3  ;;  %v49_v8 = vsub.s32 1, %v44_v3  ;;  %vm35_vm0 = vcmp.lt.s32.totalorder %v27_v4, 1  ;;  %vm28_vm1 = vcmp.lt.s32.totalorder %v27_v4, 16  ;;  %p128_p0 = scmp.ne.s32.totalorder %s113_s24, %s127_s26  ;;  %p132_p1 = scmp.lt.s32.totalorder %s113_s24, %s113_s24 }
   0x8   :  { %p133_p2 = scmp.lt.s32.totalorder %s131_s27, %s127_s26 }
   0x9   :  { %v63_v13 = vrot.slane %v16_v9, %v45_v7  ;;  %v67_v14 = vrot.slane %v16_v9, %v49_v8  ;;  %v46_v15 = vrot.slane %v15_v10, %v45_v7  ;;  %v50_v24 = vrot.slane %v15_v10, %v49_v8 }
   0xa   :  { %p134_p3 = por %p133_p2, %p132_p1 }
   0xc   :  { %p135_p4 = pnand %p134_p3, %p128_p0 }
  0x74   :  { %v32_v5 = vpop.permute.xlu1 %31  ;;  %v23_v6 = vpop.permute.xlu0 %22 }
  0x78   :  { %v34_v11 = vpop.permute.xlu1 %33  ;;  %v25_v12 = vpop.permute.xlu0 %24 }
  0x79   :  { %v36_v16 = vsel %vm35_vm0, %v32_v5, %v34_v11  ;;  %v37_v17 = vsel %vm35_vm0, %v34_v11, %v32_v5  ;;  %v29_v18 = vsel %vm28_vm1, %v23_v6, %v25_v12  ;;  %v30_v19 = vsel %vm28_vm1, %v25_v12, %v23_v6 }
  0x7a   :  { %v55_v20 = vsub.f32 %v20_v0, %v37_v17  ;;  %v56_v21 = vsub.f32 %v21_v1, %v36_v16  ;;  %v38_v22 = vsub.f32 %v20_v0, %v30_v19  ;;  %v39_v23 = vsub.f32 %v21_v1, %v29_v18 }
  0x7c   :  { %v57_v25 = vand.u32 2147483647, %v55_v20  ;;  %v58_v26 = vand.u32 2147483647, %v56_v21  ;;  %v40_v27 = vand.u32 2147483647, %v38_v22 }
  0x7d   :  { %v41_v28 = vand.u32 2147483647, %v39_v23 }
  0x7e   :  { %v70_v29 = vmul.f32 %v63_v13, %v57_v25  ;;  %v71_v30 = vmul.f32 %v67_v14, %v58_v26  ;;  %v53_v31 = vmul.f32 %v46_v15, %v40_v27 }
  0x7f   :  { %v54_v32 = vmul.f32 %v50_v24, %v41_v28 }
  0x80   :  { %v75_v33 = vadd.f32 %v71_v30, %v70_v29 }
  0x81   :  { %v72_v34 = vadd.f32 %v54_v32, %v53_v31 }
  0x82   :  { %76 = vadd.xlane.f32.xlu1 %v75_v33 }
  0x83   :  { %73 = vadd.xlane.f32.xlu0 %v72_v34 }
 0x10f   :  { %v77_v37 = vpop.xlane.xlu1 %76 }
 0x110   :  { %v74_v35 = vpop.xlane.xlu0 %73  ;;  %v92_v38 = vsel %vm80_vm2, %v77_v37, 0.0 }
 0x111   :  { %v81_v36 = vsel %vm80_vm2, %v74_v35, 0.0 }
 0x112   :  { %82 = vadd.xlane.f32.xlu0 %v81_v36 }
 0x116   :  { %93 = vadd.xlane.f32.xlu0 %v92_v38 }
 0x19f   :  { %v83_v39 = vpop.xlane.xlu0 %82 }
 0x1a0   :  { %v84_v40 = vrot.slane %v83_v39, 4 }
 0x1a2   :  { %v85_v41 = vadd.f32 %v84_v40, %v83_v39 }
 0x1a3   :  { %v94_v42 = vpop.xlane.xlu0 %93 }
 0x1a4   :  { %v86_v43 = vrot.slane %v85_v41, 2  ;;  %v95_v44 = vrot.slane %v94_v42, 4 }
 0x1a6   :  { %v96_v45 = vadd.f32 %v95_v44, %v94_v42  ;;  %v87_v46 = vadd.f32 %v86_v43, %v85_v41 }
 0x1a8   :  { %v97_v47 = vrot.slane %v96_v45, 2  ;;  %v88_v48 = vrot.slane %v87_v46, 1 }
 0x1aa   :  { %v98_v49 = vadd.f32 %v97_v47, %v96_v45  ;;  %v89_v50 = vadd.f32 %v88_v48, %v87_v46 }
 0x1ac   :  { %120 = vpush %v89_v50  ;;  %v99_v51 = vrot.slane %v98_v49, 1 }
 0x1ae   :  { %v100_v52 = vadd.f32 %v99_v51, %v98_v49 }
 0x1b0   :  { %122 = vpush %v100_v52 }
 0x1dd   :  { %s121_s0 = spop %120 }
 0x1de   :  { %s91_s1 = smul.f32 0.00052083336, %s121_s0 }
 0x1e1   :  { %s123_s2 = spop %122 }
 0x1e2   :  { %s102_s22 = smul.f32 0.00052083336, %s123_s2 }
 0x1e4   :  { %s103_s25 = sadd.f32 %s102_s22, %s91_s1 }
 0x1e6   :  { %v104_v53 = vstv %s103_s25 }
 0x1e7   :  { %105 = vst [vmem:[#allocation2] sm:$0x1] %v104_v53 }
 0x1e8   :  { %138 = shalt.err (!%p135_p4)
}
 0x1e9   :  { %s139_s30 = scalar_lea.hbm %s201_s3, 16 }
 0x1ea   :  { %p140_p5 = scmp.ne.s32.totalorder %s201_s3, %s139_s30  ;;  %p143_p6 = scmp.lt.u32.totalorder %s139_s30, %s201_s3 }
 0x1ec   :  { %p145_p7 = pnand %p143_p6, %p140_p5 }
 0x1ee   :  { %148 = shalt.err (!%p145_p7)
}
 0x1ef   :  { %115 = dma.vmem_to_hbm [thread:$0]  %s113_s24, 16, %s201_s3, [#allocation3]  }
 0x1f0   :  { %149 = dma.done.wait [#allocation3], 16  }
 0x1f1   :  { %150 = vsyncadd [#allocation3], 4294967280 }
 0x1f2   :  { %119 = vsyncpa [#allocation3], 1 }

</bundles_post_ra>
